<compile_context>
chip_gen: v6e
topology: v6e:2x2x1
jax: 0.10.0
libtpu: 0.0.40
codegen_flags: <defaults>
</compile_context>

<pallas_src>
import math

import jax
import jax.numpy as jnp
from jax.experimental import pallas as pl
from jax.experimental.pallas import tpu as pltpu


def fraudnet_kernel(xm_ref, w12_ref, b12_ref, w3_ref, b3_ref, w4_ref, b4_ref,
                    out_ref):
    # xm_ref: (2*D, tile_b) bf16 -> upcast once; all math accumulates in f32.
    xm = xm_ref[...].astype(jnp.float32)

    # Fused input+mask branches: block-diagonal Linear + ReLU.
    # Result rows are exactly [x_feat ; m_feat] (the torch.cat along dim=1).
    feat = jnp.maximum(
        jnp.dot(w12_ref[...], xm, preferred_element_type=jnp.float32)
        + b12_ref[...],
        0.0)

    # combined[0..1]: Linear + ReLU on the concatenated features.
    h = jnp.maximum(
        jnp.dot(w3_ref[...], feat, preferred_element_type=jnp.float32)
        + b3_ref[...],
        0.0)

    # combined[2]: Dropout -> identity at inference time (eval mode).
    # combined[3..4]: Linear + Sigmoid.
    logits = (jnp.dot(w4_ref[...], h, preferred_element_type=jnp.float32)
              + b4_ref[...])
    out_ref[...] = jax.nn.sigmoid(logits)


def penn_fraudnet_forward(x, mask, params, *, tile_b=1024):
    """Fused PENNFraudNet forward pass.

    x, mask : float32 [B, input_dim]
    params  : dict with torch-layout weights:
              w1 (H1, D), b1 (H1,)   -- input_branch Linear
              w2 (H2, D), b2 (H2,)   -- mask_branch Linear
              w3 (H1, H1+H2), b3 (H1,)
              w4 (O, H1), b4 (O,)
    returns : float32 [B, O]
    """
    B, D = x.shape
    w1, b1 = params["w1"], params["b1"]
    w2, b2 = params["w2"], params["b2"]
    w3, b3 = params["w3"], params["b3"]
    w4, b4 = params["w4"], params["b4"]
    H1, H2, O = w1.shape[0], w2.shape[0], w4.shape[0]

    # --- weight prep (glue, plain JAX, happens once) ---------------------
    # Block-diagonal fusion of the two branch Linears.
    w12 = jnp.zeros((H1 + H2, 2 * D), jnp.float32)
    w12 = w12.at[:H1, :D].set(w1).at[H1:, D:].set(w2)
    b12 = jnp.concatenate([b1, b2]).reshape(H1 + H2, 1)
    b3c = b3.reshape(H1, 1)
    b4c = b4.reshape(O, 1)

    # --- activation prep: batch-in-lanes, bf16 transfer -------------------
    xm_t = jnp.concatenate([x, mask], axis=1).T.astype(jnp.bfloat16)  # (2D, B)

    tile_b = min(tile_b, B)
    grid = (pl.cdiv(B, tile_b),)

    def full_spec(arr):
        # whole-array block, same tile for every grid step (tiny weights/biases)
        return pl.BlockSpec(arr.shape, lambda i: (0,) * arr.ndim)

    out_t = pl.pallas_call(
        fraudnet_kernel,
        out_shape=jax.ShapeDtypeStruct((O, B), jnp.float32),
        grid_spec=pltpu.PrefetchScalarGridSpec(
            num_scalar_prefetch=0,
            grid=grid,
            in_specs=[
                pl.BlockSpec((2 * D, tile_b), lambda i: (0, i)),   # [x ; mask]^T
                full_spec(w12), full_spec(b12),
                full_spec(w3), full_spec(b3c),
                full_spec(w4), full_spec(b4c),
            ],
            out_specs=pl.BlockSpec((O, tile_b), lambda i: (0, i)),
        ),
        compiler_params=pltpu.CompilerParams(
            # batch axis shards across TensorCores on v7x, harmless elsewhere.
            dimension_semantics=("parallel",)),
    )(xm_t, w12, b12, w3, b3c, w4, b4c)

    return out_t.T   # back to [B, O]


def _linear_init(key, fan_in, fan_out):
    """Deterministic init mimicking PyTorch nn.Linear defaults (uniform +-1/sqrt(fan_in))."""
    kw, kb = jax.random.split(key)
    bound = 1.0 / math.sqrt(fan_in)
    w = jax.random.uniform(kw, (fan_out, fan_in), jnp.float32, -bound, bound)
    b = jax.random.uniform(kb, (fan_out,), jnp.float32, -bound, bound)
    return w, b


def make_params(key, input_dim, x_hidden_dim, mask_hidden_dim, output_dim):
    k1, k2, k3, k4 = jax.random.split(key, 4)
    w1, b1 = _linear_init(k1, input_dim, x_hidden_dim)
    w2, b2 = _linear_init(k2, input_dim, mask_hidden_dim)
    # combined[0] in_features per the module __init__ is x_hidden*mask_hidden;
    # forward requires it to equal x_hidden + mask_hidden (true for 2,2).
    w3, b3 = _linear_init(k3, x_hidden_dim * mask_hidden_dim, x_hidden_dim)
    w4, b4 = _linear_init(k4, x_hidden_dim, output_dim)
    return dict(w1=w1, b1=b1, w2=w2, b2=b2, w3=w3, b3=b3, w4=w4, b4=b4)


def reference_forward(x, mask, params):
    """Pure-JAX reference matching the PyTorch module semantics (eval mode)."""
    relu = lambda t: jnp.maximum(t, 0.0)
    xf = relu(x @ params["w1"].T + params["b1"])
    mf = relu(mask @ params["w2"].T + params["b2"])
    c = jnp.concatenate([xf, mf], axis=1)
    h = relu(c @ params["w3"].T + params["b3"])
    return jax.nn.sigmoid(h @ params["w4"].T + params["b4"])


if __name__ == "__main__":
    input_dim = 16
    x_hidden_dim = 2
    mask_hidden_dim = 2      # 2*2 == 2+2 -> forward is well defined
    output_dim = 1
    batch = 512              # multiple of 128 -> lane-dense tiles, 2 grid steps

    key = jax.random.PRNGKey(0)
    kp, kx, km = jax.random.split(key, 3)
    params = make_params(kp, input_dim, x_hidden_dim, mask_hidden_dim, output_dim)
    x = jax.random.normal(kx, (batch, input_dim), jnp.float32)
    mask = (jax.random.uniform(km, (batch, input_dim), jnp.float32) > 0.5
            ).astype(jnp.float32)

    out = penn_fraudnet_forward(x, mask, params, tile_b=256)
    out = jax.block_until_ready(out)
    assert out.shape == (batch, output_dim)

    # Tight check: reference evaluated with the same bf16-quantized activations
    # (the kernel's only precision difference is the bf16 HBM transfer).
    xq = x.astype(jnp.bfloat16).astype(jnp.float32)
    mq = mask.astype(jnp.bfloat16).astype(jnp.float32)
    ref_q = reference_forward(xq, mq, params)
    assert jnp.allclose(out, ref_q, atol=1e-4, rtol=1e-4), \
        "Pallas output mismatch vs bf16-input reference"

    # Loose sanity check against the pure-f32 reference (only bf16 input
    # quantization separates them; sigmoid outputs are in [0, 1]).
    ref = reference_forward(x, mask, params)
    assert jnp.allclose(out, ref, atol=5e-3), \
        "Pallas output mismatch vs f32 reference"

    print("KERNEL_OK")
</pallas_src>

<mosaic_0001>
module attributes {stable_mosaic.version = 11 : i64} {
  func.func @fraudnet_kernel(%arg0: i32, %arg1: memref<32x256xbf16, #tpu.memory_space<vmem>>, %arg2: memref<4x32xf32, #tpu.memory_space<vmem>>, %arg3: memref<4x1xf32, #tpu.memory_space<vmem>>, %arg4: memref<2x4xf32, #tpu.memory_space<vmem>>, %arg5: memref<2x1xf32, #tpu.memory_space<vmem>>, %arg6: memref<1x2xf32, #tpu.memory_space<vmem>>, %arg7: memref<1x1xf32, #tpu.memory_space<vmem>>, %arg8: memref<1x256xf32, #tpu.memory_space<vmem>>) attributes {dimension_semantics = [#tpu.dimension_semantics<parallel>], iteration_bounds = array<i64: 2>, scalar_prefetch = 0 : i64, scratch_operands = 0 : i64, tpu.core_type = #tpu.core_type<tc>, window_params = [{transform_indices = @transform_0, window_bounds = array<i64: 32, 256>}, {pipeline_mode = #tpu.pipeline_mode<synchronous>, transform_indices = @transform_1, window_bounds = array<i64: 4, 32>}, {pipeline_mode = #tpu.pipeline_mode<synchronous>, transform_indices = @transform_2, window_bounds = array<i64: 4, 1>}, {pipeline_mode = #tpu.pipeline_mode<synchronous>, transform_indices = @transform_3, window_bounds = array<i64: 2, 4>}, {pipeline_mode = #tpu.pipeline_mode<synchronous>, transform_indices = @transform_4, window_bounds = array<i64: 2, 1>}, {pipeline_mode = #tpu.pipeline_mode<synchronous>, transform_indices = @transform_5, window_bounds = array<i64: 1, 2>}, {pipeline_mode = #tpu.pipeline_mode<synchronous>, transform_indices = @transform_6, window_bounds = array<i64: 1, 1>}, {transform_indices = @transform_7, window_bounds = array<i64: 1, 256>}]} {
    %c0 = arith.constant 0 : index
    %c0_0 = arith.constant 0 : index
    %0 = vector.load %arg1[%c0, %c0_0] : memref<32x256xbf16, #tpu.memory_space<vmem>>, vector<32x256xbf16>
    %1 = arith.extf %0 : vector<32x256xbf16> to vector<32x256xf32>
    %c0_1 = arith.constant 0 : index
    %c0_2 = arith.constant 0 : index
    %2 = vector.load %arg2[%c0_1, %c0_2] : memref<4x32xf32, #tpu.memory_space<vmem>>, vector<4x32xf32>
    %cst = arith.constant dense<0.000000e+00> : vector<4x256xf32>
    %3 = tpu.matmul %2, %1, %cst {dimension_numbers = #tpu.dot_dimension_numbers<[1], [0], [0], [1], [0, 0, 1, 1], [], []>} : vector<4x32xf32>, vector<32x256xf32>, vector<4x256xf32> -> vector<4x256xf32>
    %c0_3 = arith.constant 0 : index
    %c0_4 = arith.constant 0 : index
    %4 = vector.load %arg3[%c0_3, %c0_4] : memref<4x1xf32, #tpu.memory_space<vmem>>, vector<4x1xf32>
    %5 = vector.broadcast %4 : vector<4x1xf32> to vector<4x256xf32>
    %6 = arith.addf %3, %5 : vector<4x256xf32>
    %cst_5 = arith.constant 0.000000e+00 : f32
    %7 = vector.broadcast %cst_5 : f32 to vector<4x256xf32>
    %8 = arith.maximumf %6, %7 : vector<4x256xf32>
    %c0_6 = arith.constant 0 : index
    %c0_7 = arith.constant 0 : index
    %9 = vector.load %arg4[%c0_6, %c0_7] : memref<2x4xf32, #tpu.memory_space<vmem>>, vector<2x4xf32>
    %cst_8 = arith.constant dense<0.000000e+00> : vector<2x256xf32>
    %10 = tpu.matmul %9, %8, %cst_8 {dimension_numbers = #tpu.dot_dimension_numbers<[1], [0], [0], [1], [0, 0, 1, 1], [], []>} : vector<2x4xf32>, vector<4x256xf32>, vector<2x256xf32> -> vector<2x256xf32>
    %c0_9 = arith.constant 0 : index
    %c0_10 = arith.constant 0 : index
    %11 = vector.load %arg5[%c0_9, %c0_10] : memref<2x1xf32, #tpu.memory_space<vmem>>, vector<2x1xf32>
    %12 = vector.broadcast %11 : vector<2x1xf32> to vector<2x256xf32>
    %13 = arith.addf %10, %12 : vector<2x256xf32>
    %cst_11 = arith.constant 0.000000e+00 : f32
    %14 = vector.broadcast %cst_11 : f32 to vector<2x256xf32>
    %15 = arith.maximumf %13, %14 : vector<2x256xf32>
    %c0_12 = arith.constant 0 : index
    %c0_13 = arith.constant 0 : index
    %16 = vector.load %arg6[%c0_12, %c0_13] : memref<1x2xf32, #tpu.memory_space<vmem>>, vector<1x2xf32>
    %cst_14 = arith.constant dense<0.000000e+00> : vector<1x256xf32>
    %17 = tpu.matmul %16, %15, %cst_14 {dimension_numbers = #tpu.dot_dimension_numbers<[1], [0], [0], [1], [0, 0, 1, 1], [], []>} : vector<1x2xf32>, vector<2x256xf32>, vector<1x256xf32> -> vector<1x256xf32>
    %c0_15 = arith.constant 0 : index
    %c0_16 = arith.constant 0 : index
    %18 = vector.load %arg7[%c0_15, %c0_16] : memref<1x1xf32, #tpu.memory_space<vmem>>, vector<1x1xf32>
    %19 = vector.broadcast %18 : vector<1x1xf32> to vector<1x256xf32>
    %20 = arith.addf %17, %19 : vector<1x256xf32>
    %21 = arith.negf %20 : vector<1x256xf32>
    %22 = math.exp %21 : vector<1x256xf32>
    %cst_17 = arith.constant 1.000000e+00 : f32
    %23 = vector.broadcast %cst_17 : f32 to vector<1x256xf32>
    %24 = arith.addf %23, %22 : vector<1x256xf32>
    %25 = arith.divf %23, %24 : vector<1x256xf32>
    %c0_18 = arith.constant 0 : index
    %c0_19 = arith.constant 0 : index
    %26 = vector.load %arg8[%c0_18, %c0_19] : memref<1x256xf32, #tpu.memory_space<vmem>>, vector<1x256xf32>
    tpu.vector_store %arg8[%c0_18, %c0_19], %25 {strides = array<i32>} : memref<1x256xf32, #tpu.memory_space<vmem>>, vector<1x256xf32>,
    return
  }
  func.func @transform_0(%arg0: i32) -> (i32, i32) {
    %c0_i32 = arith.constant 0 : i32
    %c0_i32_0 = arith.constant 0 : i32
    return %c0_i32, %arg0 : i32, i32
  }
  func.func @transform_1(%arg0: i32) -> (i32, i32) {
    %c0_i32 = arith.constant 0 : i32
    %c0_i32_0 = arith.constant 0 : i32
    %c0_i32_1 = arith.constant 0 : i32
    return %c0_i32, %c0_i32_0 : i32, i32
  }
  func.func @transform_2(%arg0: i32) -> (i32, i32) {
    %c0_i32 = arith.constant 0 : i32
    %c0_i32_0 = arith.constant 0 : i32
    %c0_i32_1 = arith.constant 0 : i32
    return %c0_i32, %c0_i32_0 : i32, i32
  }
  func.func @transform_3(%arg0: i32) -> (i32, i32) {
    %c0_i32 = arith.constant 0 : i32
    %c0_i32_0 = arith.constant 0 : i32
    %c0_i32_1 = arith.constant 0 : i32
    return %c0_i32, %c0_i32_0 : i32, i32
  }
  func.func @transform_4(%arg0: i32) -> (i32, i32) {
    %c0_i32 = arith.constant 0 : i32
    %c0_i32_0 = arith.constant 0 : i32
    %c0_i32_1 = arith.constant 0 : i32
    return %c0_i32, %c0_i32_0 : i32, i32
  }
  func.func @transform_5(%arg0: i32) -> (i32, i32) {
    %c0_i32 = arith.constant 0 : i32
    %c0_i32_0 = arith.constant 0 : i32
    %c0_i32_1 = arith.constant 0 : i32
    return %c0_i32, %c0_i32_0 : i32, i32
  }
  func.func @transform_6(%arg0: i32) -> (i32, i32) {
    %c0_i32 = arith.constant 0 : i32
    %c0_i32_0 = arith.constant 0 : i32
    %c0_i32_1 = arith.constant 0 : i32
    return %c0_i32, %c0_i32_0 : i32, i32
  }
  func.func @transform_7(%arg0: i32) -> (i32, i32) {
    %c0_i32 = arith.constant 0 : i32
    %c0_i32_0 = arith.constant 0 : i32
    return %c0_i32, %arg0 : i32, i32
  }
}

</mosaic_0001>

<bundles_post_ra>
// kernel: tpu_custom_call.1
= control target key start
LH: loop header
LB: loop body
LE: loop exit
PB: predicated region body
PF: predicated region fallthrough
CT: control target
= control target key end

     0   :  { %s1091_s0 = inlined_call_operand.hbm [shape: bf16[32,512], index: 0, kind: input, shape index: {}]   ;;  %s1092_s1 = inlined_call_operand.vmem [shape: f32[4,32], index: 1, kind: input, shape index: {}]   ;;  %s1093_s2 = inlined_call_operand.vmem [shape: f32[4,1], index: 2, kind: input, shape index: {}]   ;;  %s1094_s3 = inlined_call_operand.vmem [shape: f32[2,4], index: 3, kind: input, shape index: {}]   ;;  %s1095_s4 = inlined_call_operand.vmem [shape: f32[2,1], index: 4, kind: input, shape index: {}]   ;;  %s1096_s5 = inlined_call_operand.vmem [shape: f32[1,2], index: 5, kind: input, shape index: {}]   ;;  %s1097_s6 = inlined_call_operand.<no memory space> [shape: f32[1,1], index: 6, kind: input, shape index: {}]   ;;  %s1098_s7 = inlined_call_operand.hbm [shape: f32[1,512], index: 7, kind: output, shape index: {}]  }
   0x1   :  { %v12_v0 = vstv %s1097_s6 }
   0x2   :  { %13 = vst [vmem:[#allocation2] sm:$0x1] %v12_v0 }
   0x3   :  { %14 = vsyncpa [#allocation4], 0 }
   0x4   :  { %16 = vsyncpa [#allocation4 + $0x1], 0 }
   0x5   :  { %17 = vsyncpa [#allocation5], 0 }
   0x6   :  { %19 = vsyncpa [#allocation5 + $0x1], 0  ;;  %s933_s26 = smov 0   ;;  %s935_s27 = smov 0  }
   0x7   :  { %s937_s28 = smov 0   ;;  %s939_s29 = smov 0  }
   0x8 LB: > { %s954_s6 = sadd.s32 4294967295, %s880_s29   ;;  %s701_s30 = sadd.s32 4294967294, %s880_s29   ;;  %s880_s29 = sphi %s939_s29, %s1114_s29   ;;  %s876_s28 = sphi %s937_s28, %s1113_s28   ;;  %s872_s27 = sphi %s935_s27, %s1112_s27   ;;  %s868_s26 = sphi %s933_s26, %s1111_s26  }
   0x9   : > { %s958_s8 = sadd.s32 1, %s880_s29   ;;  %s32_s9 = sadd.s32 1, %s876_s28 }
   0xa   : > { %s29_s10 = ssub.s32 %s880_s29, %s958_s8  ;;  %p39_p0 = scmp.ne.s32.totalorder %s876_s28, %s872_s27 }
   0xb   : > { %p30_p1 = scmp.eq.s32.totalorder %s29_s10, 0  ;;  %p40_p2 = scmp.eq.s32.totalorder %s880_s29, 0 }
   0xc   : > { %p45_p3 = scmp.ne.s32.totalorder %s872_s27, %s868_s26  ;;  %p46_p4 = scmp.eq.s32.totalorder %s954_s6, 0 }
   0xd   : > { %s970_s11 = scalar_select %p30_p1, %s876_s28, %s32_s9  }
   0xe   : > { %p972_p5 = por %p40_p2, %p39_p0  ;;  %p976_p6 = por %p46_p4, %p45_p3 }
   0xf   : > { %p195_p7 = scmp.eq.s32.totalorder %s954_s6, 1  ;;  %p201_p8 = scmp.eq.s32.totalorder %s701_s30, 1 }
  0x10   : > { %s1102_s13 = scalar_select %p976_p6, 1, 0 }
  0x11   : > { %p738_p10 = scmp.lt.s32.totalorder %s880_s29, 2  ;;  %p983_p11 = por %p195_p7, %p39_p0 }
  0x12   : > { %p987_p12 = por %p201_p8, %p45_p3  ;;  %s239_s16 = sand.u32 1, %s876_s28  }
  0x13   : > { %s1103_s14 = scalar_select %p983_p11, 1, 0 }
  0x14   : > { %s1104_s15 = scalar_select %p987_p12, 1, 0 }
  0x15   : > { %s724_s17 = sshll.u32 %s880_s29, 7  ;;  %s704_s18 = sshll.u32 %s239_s16, 5 }
  0x16   : > { %s996_s21 = scalar_lea.hbm %s1091_s0, %s724_s17  ;;  %s243_s22 = scalar_lea.vmem [#allocation3], %s704_s18 }
  0x17   : > { %s250_s23 = sshll.u32 %s243_s22, 4  ;;  %p1000_p13 = pnand %p738_p10, %p972_p5  ;;  %s1004_s23 = int_to_ptr.vmem [resolvable:$true] %s250_s23 }
  0x18   : > { %s1007_s25 = scalar_lea.sflag [#allocation4], %s239_s16  ;;  %s788_s30 = scalar_lea.hbm %s996_s21, 512 }
  0x19   : > { %p789_p1 = scmp.ne.s32.totalorder %s996_s21, %s788_s30  ;;  %p790_p2 = pneg %p1000_p13 }
  0x1a   : > { %s793_s12 = scalar_lea.hbm %s1091_s0, 1024  ;;  %p794_p5 = scmp.lt.s32.totalorder %s996_s21, %s1091_s0 }
  0x1b   : > { %p791_p3 = pnand %p790_p2, %p789_p1  ;;  %p795_p7 = scmp.lt.s32.totalorder %s793_s12, %s788_s30 }
  0x1d   : > { %p792_p4 = pneg %p791_p3  ;;  %p796_p8 = por %p795_p7, %p794_p5 }
  0x1f   : > { %p797_p10 = pnand %p796_p8, %p792_p4 }
  0x21   : > { %800 = shalt.err (!%p797_p10)
}
  0x22   : > { %s801_s16 = scalar_lea.vmem %s1004_s23, 512  ;;  %s882_s19 = smov [#allocation3]  }
  0x23   : > { %p802_p9 = scmp.ne.s32.totalorder %s1004_s23, %s801_s16  ;;  %s806_s20 = sshll.u32 %s882_s19, 4  ;;  %s807_s20 = int_to_ptr.vmem [resolvable:$false] %s806_s20 }
  0x24   : > { %s808_s22 = scalar_lea.vmem %s807_s20, 1024  ;;  %p809_p3 = scmp.lt.s32.totalorder %s1004_s23, %s807_s20 }
  0x25   : > { %p804_p0 = pnand %p802_p9, %p790_p2  ;;  %p810_p12 = scmp.lt.s32.totalorder %s808_s22, %s801_s16 }
  0x27   : > { %p805_p1 = pneg %p804_p0  ;;  %p811_p11 = por %p810_p12, %p809_p3 }
  0x29   : > { %p812_p6 = pnand %p811_p11, %p805_p1 }
  0x2b   : > { %815 = shalt.err (!%p812_p6)
}
  0x2c   : > { %s883_s30 = smov 256   ;;  %s884_s9 = smov 128  }
  0x2d   : > { %s885_s10 = smov 8   ;;  %p258_p9 = scmp.lt.s32.totalorder %s880_s29, 3 }
  0x2e   : > { %733 = dma.hbm_to_vmem [thread:$0]  (!%p1000_p13), %s996_s21, 512, %s1004_s23, %s1007_s25, %s883_s30, %s884_s9, %s885_s10  }
  0x2f   : > { %p1106_p0 = scmp.ge.s32.totalorder %s880_s29, 1 }
  0x31   : > { %p259_p2 = pnand %p1106_p0, %p258_p9 }
  0x32   : > { %s1032_s12 = sand.u32 (!%p259_p2), 1, %s872_s27   ;;  %p1107_p6 = scmp.ne.s32.totalorder (!%p259_p2), %s1102_s13, 0 }
  0x33   : > { %262 = sbr.rel (%p259_p2) target bundleno = 718 (0x2ce), region = 48  ;;  %s708_s17 = sshll.u32 (!%p259_p2), %s1032_s12, 5 }
  0x34   : > { %s265_s18 = scalar_lea.sflag (!%p259_p2), [#allocation4], %s1032_s12  ;;  %s268_s16 = scalar_lea.vmem (!%p259_p2), [#allocation3], %s708_s17 }
  0x38   : > { %859 = dma.done.wait (%p1107_p6), %s265_s18, 512  }
  0x39   : > { %861 = vsyncadd (%p1107_p6), %s265_s18, 4294966784  ;;  %v886_v1 = vmov 0.0   ;;  %v887_v2 = vmov 0   ;;  %v304_v3 = vld [vmem:[%s268_s16 + $0x18] sm:$0xff]  ;;  %v303_v4 = vld [vmem:[%s268_s16 + $0x10] sm:$0xff]  ;;  %vm320_vm0 = vcmask 261120   ;;  %v495_v35 = vlaneseq }
  0x3a   : > { %388 = vmatprep.mubr.f32.mxu0 %v886_v1  ;;  %778 = vset.pattern.permute.xlu0 %v887_v2  ;;  %v302_v5 = vld [vmem:[%s268_s16 + $0x8] sm:$0xff]  ;;  %v312_v6 = vunpack.c.h.bf16 %v304_v3  ;;  %v311_v7 = vunpack.c.l.bf16 %v304_v3  ;;  %v310_v8 = vunpack.c.h.bf16 %v303_v4  ;;  %v314_v9 = vld [vmem:[%s1093_s2] sm:$0xf]  ;;  %v309_v10 = vunpack.c.l.bf16 %v303_v4  ;;  %s709_s10 = sshll.u32 %s1032_s12, 1  ;;  %s725_s17 = sshll.u32 %s954_s6, 5 }
  0x3b   : > { %479 = vmatprep.mubr.f32.mxu1 %v886_v1  ;;  %779 = vset.pattern.permute.xlu1 %v887_v2  ;;  %v301_v11 = vld [vmem:[%s268_s16] sm:$0xff]  ;;  %v308_v12 = vunpack.c.h.bf16 %v302_v5  ;;  %v307_v14 = vunpack.c.l.bf16 %v302_v5  ;;  %vm408_vm1 = vcmask 1043456   ;;  %vm404_vm2 = vcmask 31744   ;;  %v489_v26 = vld [vmem:[#allocation2] sm:$0x1]  ;;  %s298_s18 = scalar_lea.vmem [#allocation6], %s709_s10  ;;  %s629_s13 = scalar_lea.hbm %s1098_s7, %s725_s17 }
  0x3c   : > { %317 = vperm.xlu0 %778, %v314_v9   ;;  %348 = vmatprep.subr.mxu0 %v312_v6  ;;  %v398_v13 = vld [vmem:[%s1095_s4] sm:$0x3]  ;;  %v306_v15 = vunpack.c.h.bf16 %v301_v11  ;;  %v305_v16 = vunpack.c.l.bf16 %v301_v11  ;;  %vm503_vm3 = vcmask 1041408   ;;  %vm499_vm4 = vcmask 15360   ;;  %s631_s16 = sshll.u32 %s298_s18, 4  ;;  %s617_s24 = scalar_lea.sflag [#allocation5], %s1032_s12  ;;  %s632_s16 = int_to_ptr.vmem [resolvable:$true] %s631_s16 }
  0x3d   : > { %349 = vmatpush1.msra.mxu0 %v311_v7  ;;  %v313_v17 = vld [vmem:[%s1092_s1] sm:$0xf]  ;;  %492 = vperm.xlu1 %779, %v489_v26   ;;  %v496_v36 = vshrl.u32 %v495_v35, 7  ;;  %v888_v50 = vmov 1966171168   ;;  %vm613_vm5 = vcmp.lt.s32.totalorder %v495_v35, 256 }
  0x3e   : > { %350 = vmatprep.subr.mxu0 %v310_v8  ;;  %v397_v25 = vld [vmem:[%s1094_s3] sm:$0x3]  ;;  %v597_v51 = vunpack.c.l.s4 %v888_v50  ;;  %s816_s25 = scalar_lea.vmem %s632_s16, 32  ;;  %p1108_p12 = scmp.ne.s32.totalorder %s1103_s14, 0 }
  0x3f   : > { %351 = vmatpush1.msra.mxu0 %v309_v10  ;;  %v488_v34 = vld [vmem:[%s1096_s5] sm:$0x1]  ;;  %v497_v37 = vsub.s32 0, %v496_v36  ;;  %p817_p11 = scmp.ne.s32.totalorder %s632_s16, %s816_s25  ;;  %s889_s19 = smov [#allocation6]  }
  0x40   : > { %401 = vperm.xlu0 %778, %v398_v13   ;;  %352 = vmatprep.subr.mxu0 %v308_v12  ;;  %v598_v52 = vunpack.c.0.s8 %v597_v51  ;;  %s820_s20 = sshll.u32 %s889_s19, 4  ;;  %s821_s20 = int_to_ptr.vmem [resolvable:$false] %s820_s20 }
  0x41   : > { %353 = vmatpush1.msra.mxu0 %v307_v14  ;;  %p818_p13 = pnand %p817_p11, %p1108_p12  ;;  %s822_s6 = scalar_lea.vmem %s821_s20, 64 }
  0x42   : > { %354 = vmatprep.subr.mxu0 %v306_v15  ;;  %v601_v54 = vsub.s32 %v598_v52, %v496_v36  ;;  %p823_p5 = scmp.lt.s32.totalorder %s632_s16, %s821_s20  ;;  %p824_p7 = scmp.lt.s32.totalorder %s822_s6, %s816_s25 }
  0x43   : > { %355 = vmatpush1.msra.mxu0 %v305_v16  ;;  %p819_p4 = pneg %p818_p13 }
  0x44   : > { %710 = vmatmul.mubr.msk.f32.vlgmr.msra.gmra.mxu0 %vm320_vm0, %v313_v17  ;;  %p825_p8 = por %p824_p7, %p823_p5 }
  0x46   : > { %p826_p10 = pnand %p825_p8, %p819_p4 }
  0xb7   : > { %v318_v19 = vpop.permute.xlu0 %317 }
  0xb8   : > { %v493_v38 = vpop.permute.xlu1 %492 }
  0xb9   : > { %v498_v39 = vrot.slane %v493_v38, %v497_v37 }
  0xbb   : > { %v402_v28 = vpop.permute.xlu0 %401 }
 0x104   : > { %v390_v18 = vpop.f32.mrf.mxu0 }
 0x105   : > { %v391_v20 = vadd.f32 %v390_v18, %v318_v19 }
 0x106   : > { %v392_v21 = vpop.f32.mrf.mxu0 }
 0x107   : > { %v393_v22 = vadd.f32 %v392_v21, %v318_v19  ;;  %v395_v24 = vmax.f32 %v391_v20, 0.0 }
 0x109   : > { %v396_v23 = vmax.f32 %v393_v22, 0.0 }
 0x10b   : > { %711 = vmatprep.subr.msk.mxu1 %vm408_vm1, %v396_v23 }
 0x10c   : > { %712 = vmatpush1.msk.msra.mxu1 %vm408_vm1, %v395_v24 }
 0x10d   : > { %713 = vmatmul.mubr.msk.f32.vlgmr.msra.gmra.mxu1 %vm404_vm2, %v397_v25 }
 0x10e   : > { %574 = vmatprep.mubr.f32.mxu1 %v886_v1 }
 0x1cd   : > { %v481_v27 = vpop.f32.mrf.mxu1 }
 0x1ce   : > { %v482_v29 = vadd.f32 %v481_v27, %v402_v28 }
 0x1cf   : > { %v483_v30 = vpop.f32.mrf.mxu1 }
 0x1d0   : > { %v484_v31 = vadd.f32 %v483_v30, %v402_v28  ;;  %v486_v33 = vmax.f32 %v482_v29, 0.0 }
 0x1d2   : > { %v487_v32 = vmax.f32 %v484_v31, 0.0 }
 0x1d4   : > { %714 = vmatprep.subr.msk.mxu1 %vm503_vm3, %v487_v32 }
 0x1d5   : > { %715 = vmatpush1.msk.msra.mxu1 %vm503_vm3, %v486_v33 }
 0x1d6   : > { %716 = vmatmul.mubr.msk.f32.vlgmr.msra.gmra.mxu1 %vm499_vm4, %v488_v34 }
 0x296   : > { %v576_v40 = vpop.f32.mrf.mxu1 }
 0x297   : > { %v577_v41 = vadd.f32 %v576_v40, %v498_v39 }
 0x298   : > { %v578_v42 = vpop.f32.mrf.mxu1 }
 0x299   : > { %v717_v43 = vmul.f32 -1.442695, %v577_v41  ;;  %v579_v44 = vadd.f32 %v578_v42, %v498_v39 }
 0x29b   : > { %780 = vpow2.f32 %v717_v43  ;;  %v718_v45 = vmul.f32 -1.442695, %v579_v44 }
 0x29d   : > { %782 = vpow2.f32 %v718_v45 }
 0x2a8   : > { %v781_v46 = vpop.eup %780 }
 0x2a9   : > { %v587_v47 = vadd.f32 1.0, %v781_v46 }
 0x2aa   : > { %v783_v48 = vpop.eup %782 }
 0x2ab   : > { %v588_v49 = vadd.f32 1.0, %v783_v48  ;;  %784 = vrcp.f32 %v587_v47 }
 0x2ad   : > { %786 = vrcp.f32 %v588_v49 }
 0x2b8   : > { %v785_v53 = vpop.eup %784 }
 0x2ba   : > { %v787_v55 = vpop.eup %786 }
 0x2bb   : > { %v595_v56 = vcombine.low %v785_v53, %v787_v55 }
 0x2bd   : > { %v602_v57 = vrot.slane %v595_v56, %v601_v54 }
 0x2bf   : > { %v609_v58 = vrot.slane %v602_v57, %v601_v54 }
 0x2c1   : > { %615 = vst.msk [vmem:[%s298_s18] sm:$0x3] %vm613_vm5, %v609_v58 }
 0x2c2   : > { %829 = shalt.err (!%p826_p10)
}
 0x2c3   : > { %s830_s22 = scalar_lea.hbm %s629_s13, 32  ;;  %s834_s9 = scalar_lea.hbm %s1098_s7, 64 }
 0x2c4   : > { %p831_p1 = scmp.ne.s32.totalorder %s629_s13, %s830_s22  ;;  %p835_p0 = scmp.lt.s32.totalorder %s629_s13, %s1098_s7 }
 0x2c5   : > { %p836_p2 = scmp.lt.s32.totalorder %s834_s9, %s830_s22 }
 0x2c6   : > { %p832_p3 = pnand %p831_p1, %p1108_p12 }
 0x2c7   : > { %p837_p6 = por %p836_p2, %p835_p0 }
 0x2c8   : > { %p833_p9 = pneg %p832_p3 }
 0x2ca   : > { %p838_p11 = pnand %p837_p6, %p833_p9 }
 0x2cc   : > { %841 = shalt.err (!%p838_p11)
}
 0x2cd   : > { %728 = dma.vmem_to_hbm [thread:$0]  (%p1108_p12), %s632_s16, 32, %s629_s13, %s617_s24  }
 0x2ce PF: > { %s643_s18 = sand.u32 1, %s868_s26   ;;  %p1109_p13 = scmp.ne.s32.totalorder %s1104_s15, 0 }
 0x2cf   : > { %p1110_p4 = scmp.ge.s32.totalorder %s880_s29, 2  ;;  %s644_s21 = scalar_lea.sflag [#allocation5], %s643_s18 }
 0x2d1   : > { %p735_p5 = pnand %p1110_p4, %p1109_p13 }
 0x2d3   : > { %p736_p7 = pneg %p735_p5 }
 0x2d5   : > { %863 = dma.done.wait (%p736_p7), %s644_s21, 32  }
 0x2d6   : > { %865 = vsyncadd (%p736_p7), %s644_s21, 4294967264  ;;  %p22_p8 = scmp.ge.s32.totalorder %s958_s8, 4   ;;  %s1111_s26 = smov %s872_s27 }
 0x2d7   : > { %s1112_s27 = smov %s876_s28  ;;  %s1113_s28 = smov %s970_s11 }
 0x2d8   : > { %s1114_s29 = smov %s958_s8  ;;  %24 = sbr.rel (!%p22_p8) target bundleno = 8 (0x8), region = 93 }
 0x2dd   :  { %649 = vsyncpa [#allocation4], 1 }
 0x2de   :  { %651 = vsyncpa [#allocation4 + $0x1], 1 }
 0x2df   :  { %652 = vsyncpa [#allocation5], 1 }
 0x2e0   :  { %654 = vsyncpa [#allocation5 + $0x1], 1 }

</bundles_post_ra>
